<compile_context>
chip_gen: v6e
topology: v6e:2x2x1
jax: 0.10.0
libtpu: 0.0.40
codegen_flags: <defaults>
</compile_context>

<pallas_src>
import functools

import jax
import jax.numpy as jnp
from jax.experimental import pallas as pl
from jax.experimental.pallas import tpu as pltpu

TAPS = 7
PAD = 3  # (TAPS - 1) // 2


def forfilter_kernel(w_ref, x_ref, o_ref, *, H, W):
    """7-tap vertical filter with replicate padding on flattened channels.

    w_ref: SMEM (7,) f32       -- shared (7, 1) conv kernel, flattened
    x_ref: VMEM (Tn, H*W)      -- Tn channel images, each flattened row-major
    o_ref: VMEM (Tn, H*W)
    """
    x = x_ref[...]                       # one dense load, native dtype
    first = x[:, :W]                     # row 0   (replicated above the top)
    last = x[:, (H - 1) * W:]            # row H-1 (replicated below the bottom)

    acc = None
    for k in range(TAPS):                # static -> fully unrolled
        s = k - PAD                      # vertical shift in rows, -3..+3
        if s == 0:
            sh = x
        elif s < 0:
            parts = [first] * min(-s, H)
            if H + s > 0:
                parts.append(x[:, :(H + s) * W])
            sh = jnp.concatenate(parts, axis=1)
        else:
            parts = []
            if H - s > 0:
                parts.append(x[:, s * W:])
            parts += [last] * min(s, H)
            sh = jnp.concatenate(parts, axis=1)
        term = w_ref[k] * sh.astype(jnp.float32)   # f32 accumulation
        acc = term if acc is None else acc + term
    o_ref[...] = acc.astype(o_ref.dtype)


def _round_up(v, m):
    return (v + m - 1) // m * m


def _vmem_budget_bytes():
    """Physical VMEM minus headroom for Mosaic internal scratch/temps."""
    phys = 128 << 20
    try:
        info = pltpu.get_tpu_info()
        phys = int(getattr(info, "vmem_capacity_bytes", phys) or phys)
    except Exception:
        pass
    # 128-MiB parts (v5e/v6e) -> 112 MiB; 64-MiB v7x -> 48 MiB.
    return max(phys - (16 << 20), 32 << 20)


def _block_bytes(tn, hw_pad, itemsize):
    """Padded, double-buffered per-grid-step footprint (upper bound)."""
    sublane = {4: 8, 2: 16, 1: 32}.get(itemsize, 8)
    io_blk = _round_up(tn, sublane) * hw_pad * itemsize
    f32_blk = _round_up(tn, 8) * hw_pad * 4
    # 2x in + 2x out (double buffering) + ~3 f32 full-tile temporaries for the
    # shifted-slice accumulation chain.
    return 4 * io_blk + 3 * f32_blk


def _pick_tn(n, hw_pad, itemsize, budget):
    """Channel images per grid step."""
    row_bytes = max(hw_pad * itemsize, 1)
    tn = min(max(1, (4 << 20) // row_bytes), n)          # ~4 MiB input blocks
    # Keep >= ~8 grid steps (3-4 per v7x TensorCore) when there is enough work.
    if n >= 64 and pl.cdiv(n, tn) < 8:
        tn = pl.cdiv(n, 8)
    # Second-to-last block dim must be a multiple of 8 or equal the full dim.
    if tn < n:
        tn = min(n, max(8, _round_up(tn, 8)))
    # Shrink if the padded double-buffered footprint would not fit in VMEM.
    while tn > 8 and _block_bytes(tn, hw_pad, itemsize) > budget:
        nt = max(8, (tn // 2) // 8 * 8)
        if nt >= tn:
            break
        tn = nt
    return tn


def forfilter(x, weight, *, block_rows=None):
    """Shared 7x1 replicate-padded conv applied to every channel of x.

    x: (B, C, H, W); weight: (7,) taps of the shared Conv2d(1, 1, (7, 1)).
    block_rows: optional override of channel-images per grid step (testing).
    """
    B, C, H, W = x.shape
    N = B * C
    HW = H * W
    x2 = x.reshape(N, HW)                      # free reshape of contiguous NCHW
    w = jnp.asarray(weight, jnp.float32).reshape(TAPS)

    itemsize = jnp.dtype(x.dtype).itemsize
    hw_pad = _round_up(HW, 128)                # lane padding of the VMEM tile
    budget = _vmem_budget_bytes()

    tn = block_rows if block_rows is not None else _pick_tn(N, hw_pad, itemsize, budget)
    grid = (pl.cdiv(N, tn),)                   # partial last block: writes masked

    needed = _block_bytes(tn, hw_pad, itemsize) + (8 << 20)
    vmem_limit = int(min(max(needed, 32 << 20), budget))

    kernel = functools.partial(forfilter_kernel, H=H, W=W)
    out = pl.pallas_call(
        kernel,
        out_shape=jax.ShapeDtypeStruct((N, HW), x.dtype),
        grid_spec=pltpu.PrefetchScalarGridSpec(
            num_scalar_prefetch=0,
            grid=grid,
            in_specs=[
                pl.BlockSpec(memory_space=pltpu.MemorySpace.SMEM),  # taps (7,)
                pl.BlockSpec((tn, HW), lambda n: (n, 0)),
            ],
            out_specs=pl.BlockSpec((tn, HW), lambda n: (n, 0)),
        ),
        compiler_params=pltpu.CompilerParams(
            dimension_semantics=("parallel",),
            vmem_limit_bytes=vmem_limit,
        ),
    )(w, x2)
    return out.reshape(B, C, H, W)


def forfilter_ref(x, weight):
    """Pure-JAX reference mirroring the PyTorch forward."""
    B, C, H, W = x.shape
    x_pad = jnp.pad(x, ((0, 0), (0, 0), (PAD, PAD), (0, 0)), mode="edge")
    x_pad = x_pad.astype(jnp.float32)
    out = jnp.zeros((B, C, H, W), jnp.float32)
    for k in range(TAPS):
        out = out + weight[k] * x_pad[:, :, k:k + H, :]
    return out.astype(x.dtype)


if __name__ == "__main__":
    key = jax.random.PRNGKey(0)
    kw, kx, kx2, kx3 = jax.random.split(key, 4)

    # Deterministic stand-in for the Conv2d(1, 1, (7, 1)) weight, flattened.
    weight = jax.random.normal(kw, (TAPS,), dtype=jnp.float32) * 0.1

    # Main shape implied by the module (B, C=inplanes, H, W).
    B, C, H, W = 2, 4, 16, 16
    x = jax.random.normal(kx, (B, C, H, W), dtype=jnp.float32)
    out = jax.block_until_ready(forfilter(x, weight))
    ref = forfilter_ref(x, weight)
    assert out.shape == (B, C, H, W)
    assert jnp.allclose(out, ref, atol=1e-5, rtol=1e-5)

    # Odd channel count: N == B*C == 3 -> single full-extent block.
    x2 = jax.random.normal(kx2, (1, 3, 16, 16), dtype=jnp.float32)
    out2 = jax.block_until_ready(forfilter(x2, weight))
    assert jnp.allclose(out2, forfilter_ref(x2, weight), atol=1e-5, rtol=1e-5)

    # Partial last grid block (N=10, block_rows=8 -> grid=2, masked tail).
    x3 = jax.random.normal(kx3, (2, 5, 16, 16), dtype=jnp.float32)
    out3 = jax.block_until_ready(forfilter(x3, weight, block_rows=8))
    assert jnp.allclose(out3, forfilter_ref(x3, weight), atol=1e-5, rtol=1e-5)

    # bf16 I/O path (f32 accumulation inside the kernel).
    x4 = x.astype(jnp.bfloat16)
    out4 = jax.block_until_ready(forfilter(x4, weight))
    assert jnp.allclose(out4.astype(jnp.float32),
                        forfilter_ref(x4, weight).astype(jnp.float32),
                        atol=3e-2, rtol=3e-2)

    print("KERNEL_OK")
</pallas_src>

<mosaic_0001>
module attributes {stable_mosaic.version = 11 : i64} {
  func.func @forfilter_kernel(%arg0: i32, %arg1: memref<7xf32, #tpu.memory_space<smem>>, %arg2: memref<8x256xf32, #tpu.memory_space<vmem>>, %arg3: memref<8x256xf32, #tpu.memory_space<vmem>>) attributes {dimension_semantics = [#tpu.dimension_semantics<parallel>], iteration_bounds = array<i64: 1>, scalar_prefetch = 0 : i64, scratch_operands = 0 : i64, tpu.core_type = #tpu.core_type<tc>, window_params = [{transform_indices = @transform_0, window_bounds = array<i64: 7>}, {transform_indices = @transform_1, window_bounds = array<i64: 8, 256>}, {transform_indices = @transform_2, window_bounds = array<i64: 8, 256>}]} {
    %c0 = arith.constant 0 : index
    %c0_0 = arith.constant 0 : index
    %0 = vector.load %arg2[%c0, %c0_0] : memref<8x256xf32, #tpu.memory_space<vmem>>, vector<8x256xf32>
    %1 = vector.extract_strided_slice %0 {offsets = [0, 0], sizes = [8, 16], strides = [1, 1]} : vector<8x256xf32> to vector<8x16xf32>
    %2 = vector.extract_strided_slice %0 {offsets = [0, 240], sizes = [8, 16], strides = [1, 1]} : vector<8x256xf32> to vector<8x16xf32>
    %3 = vector.extract_strided_slice %0 {offsets = [0, 0], sizes = [8, 208], strides = [1, 1]} : vector<8x256xf32> to vector<8x208xf32>
    %4 = tpu.concatenate %1, %1, %1, %3 in 1 : vector<8x16xf32>, vector<8x16xf32>, vector<8x16xf32>, vector<8x208xf32> -> vector<8x256xf32>
    %c0_1 = arith.constant 0 : index
    %5 = memref.load %arg1[%c0_1] : memref<7xf32, #tpu.memory_space<smem>>
    %6 = vector.broadcast %5 : f32 to vector<8x256xf32>
    %7 = arith.mulf %6, %4 : vector<8x256xf32>
    %8 = vector.extract_strided_slice %0 {offsets = [0, 0], sizes = [8, 224], strides = [1, 1]} : vector<8x256xf32> to vector<8x224xf32>
    %9 = tpu.concatenate %1, %1, %8 in 1 : vector<8x16xf32>, vector<8x16xf32>, vector<8x224xf32> -> vector<8x256xf32>
    %c1 = arith.constant 1 : index
    %10 = memref.load %arg1[%c1] : memref<7xf32, #tpu.memory_space<smem>>
    %11 = vector.broadcast %10 : f32 to vector<8x256xf32>
    %12 = arith.mulf %11, %9 : vector<8x256xf32>
    %13 = arith.addf %7, %12 : vector<8x256xf32>
    %14 = vector.extract_strided_slice %0 {offsets = [0, 0], sizes = [8, 240], strides = [1, 1]} : vector<8x256xf32> to vector<8x240xf32>
    %15 = tpu.concatenate %1, %14 in 1 : vector<8x16xf32>, vector<8x240xf32> -> vector<8x256xf32>
    %c2 = arith.constant 2 : index
    %16 = memref.load %arg1[%c2] : memref<7xf32, #tpu.memory_space<smem>>
    %17 = vector.broadcast %16 : f32 to vector<8x256xf32>
    %18 = arith.mulf %17, %15 : vector<8x256xf32>
    %19 = arith.addf %13, %18 : vector<8x256xf32>
    %c3 = arith.constant 3 : index
    %20 = memref.load %arg1[%c3] : memref<7xf32, #tpu.memory_space<smem>>
    %21 = vector.broadcast %20 : f32 to vector<8x256xf32>
    %22 = arith.mulf %21, %0 : vector<8x256xf32>
    %23 = arith.addf %19, %22 : vector<8x256xf32>
    %24 = vector.extract_strided_slice %0 {offsets = [0, 16], sizes = [8, 240], strides = [1, 1]} : vector<8x256xf32> to vector<8x240xf32>
    %25 = tpu.concatenate %24, %2 in 1 : vector<8x240xf32>, vector<8x16xf32> -> vector<8x256xf32>
    %c4 = arith.constant 4 : index
    %26 = memref.load %arg1[%c4] : memref<7xf32, #tpu.memory_space<smem>>
    %27 = vector.broadcast %26 : f32 to vector<8x256xf32>
    %28 = arith.mulf %27, %25 : vector<8x256xf32>
    %29 = arith.addf %23, %28 : vector<8x256xf32>
    %30 = vector.extract_strided_slice %0 {offsets = [0, 32], sizes = [8, 224], strides = [1, 1]} : vector<8x256xf32> to vector<8x224xf32>
    %31 = tpu.concatenate %30, %2, %2 in 1 : vector<8x224xf32>, vector<8x16xf32>, vector<8x16xf32> -> vector<8x256xf32>
    %c5 = arith.constant 5 : index
    %32 = memref.load %arg1[%c5] : memref<7xf32, #tpu.memory_space<smem>>
    %33 = vector.broadcast %32 : f32 to vector<8x256xf32>
    %34 = arith.mulf %33, %31 : vector<8x256xf32>
    %35 = arith.addf %29, %34 : vector<8x256xf32>
    %36 = vector.extract_strided_slice %0 {offsets = [0, 48], sizes = [8, 208], strides = [1, 1]} : vector<8x256xf32> to vector<8x208xf32>
    %37 = tpu.concatenate %36, %2, %2, %2 in 1 : vector<8x208xf32>, vector<8x16xf32>, vector<8x16xf32>, vector<8x16xf32> -> vector<8x256xf32>
    %c6 = arith.constant 6 : index
    %38 = memref.load %arg1[%c6] : memref<7xf32, #tpu.memory_space<smem>>
    %39 = vector.broadcast %38 : f32 to vector<8x256xf32>
    %40 = arith.mulf %39, %37 : vector<8x256xf32>
    %41 = arith.addf %35, %40 : vector<8x256xf32>
    %c0_2 = arith.constant 0 : index
    %c0_3 = arith.constant 0 : index
    %42 = vector.load %arg3[%c0_2, %c0_3] : memref<8x256xf32, #tpu.memory_space<vmem>>, vector<8x256xf32>
    tpu.vector_store %arg3[%c0_2, %c0_3], %41 {strides = array<i32>} : memref<8x256xf32, #tpu.memory_space<vmem>>, vector<8x256xf32>,
    return
  }
  func.func @transform_0(%arg0: i32) -> i32 {
    %c0_i32 = arith.constant 0 : i32
    %c0_i32_0 = arith.constant 0 : i32
    return %c0_i32 : i32
  }
  func.func @transform_1(%arg0: i32) -> (i32, i32) {
    %c0_i32 = arith.constant 0 : i32
    %c0_i32_0 = arith.constant 0 : i32
    return %arg0, %c0_i32 : i32, i32
  }
  func.func @transform_2(%arg0: i32) -> (i32, i32) {
    %c0_i32 = arith.constant 0 : i32
    %c0_i32_0 = arith.constant 0 : i32
    return %arg0, %c0_i32 : i32, i32
  }
}

</mosaic_0001>

<bundles_post_ra>
// kernel: tpu_custom_call.1
= control target key start
LH: loop header
LB: loop body
LE: loop exit
PB: predicated region body
PF: predicated region fallthrough
CT: control target
= control target key end

     0   :  { %7 = vsyncpa [#allocation5], 0  ;;  %s294_s0 = inlined_call_operand.hbm [shape: f32[7], index: 0, kind: input, shape index: {}]   ;;  %s295_s1 = inlined_call_operand.hbm [shape: f32[8,256], index: 1, kind: input, shape index: {}]   ;;  %s296_s2 = inlined_call_operand.hbm [shape: f32[8,256], index: 2, kind: output, shape index: {}]  }
   0x1   :  { %8 = vsyncpa [#allocation3], 0 }
   0x2   :  { %9 = vsyncpa [#allocation4], 0  ;;  %s223_s9 = smov [#allocation2]   ;;  %s224_s12 = smov [#allocation6]  }
   0x3   :  { %17 = dma.hbm_to_smem %s294_s0, 16, %s223_s9, [#allocation5]  }
   0x4   :  { %s24_s13 = sshll.u32 %s224_s12, 4  ;;  %s25_s13 = int_to_ptr.vmem [resolvable:$true] %s24_s13 }
   0x5   :  { %s185_s14 = scalar_lea.vmem %s25_s13, 256  ;;  %p190_p1 = scmp.lt.s32.totalorder %s25_s13, %s25_s13 }
   0x6   :  { %p186_p0 = scmp.ne.s32.totalorder %s25_s13, %s185_s14  ;;  %p191_p2 = scmp.lt.s32.totalorder %s185_s14, %s185_s14 }
   0x8   :  { %p192_p3 = por %p191_p2, %p190_p1 }
   0xa   :  { %p193_p4 = pnand %p192_p3, %p186_p0 }
   0xc   :  { %196 = shalt.err (!%p193_p4)
}
   0xd   :  { %27 = dma.hbm_to_vmem [thread:$0]  %s295_s1, 256, %s25_s13, [#allocation3]  }
   0xe   :  { %217 = dma.done.wait [#allocation5], 16  }
   0xf   :  { %218 = vsyncadd [#allocation5], 4294967280 }
  0x10   :  { %219 = dma.done.wait [#allocation3], 256  }
  0x11   :  { %220 = vsyncadd [#allocation3], 4294967040 }
  0x12   :  { %34 = sfence }
  0x13   :  { %v35_v0 = vld [vmem:[#allocation6] sm:$0xff]  ;;  %s225_s0 = smov 48   ;;  %s226_s17 = smov 16   ;;  %v253_v1 = vld [vmem:[#allocation6 + $0x8] sm:$0xff]  ;;  %vm53_vm0 = vcmask 130048   ;;  %vm55_vm1 = vcmask 261120  }
  0x14   :  { %45 = vrot.lane.b32.xlu1 %v35_v0, %s225_s0  ;;  %38 = vrot.lane.b32.xlu0 %v35_v0, %s226_s17  ;;  %s227_s18 = smov 32   ;;  %s228_s1 = smov 112   ;;  %vm49_vm2 = vcmask 392192   ;;  %vm92_vm3 = vcmask 916480   ;;  %vm107_vm4 = vcmask 785408   ;;  %vm123_vm5 = vcmask 654336  }
  0x15   :  { %s229_s19 = smov 96   ;;  %s230_s20 = smov 80  }
  0x16   :  { %s154_s21 = sld [smem:[#allocation2 + $0x1]]  ;;  %s231_s28 = smov [#allocation7]  }
  0x17   :  { %s58_s22 = sld [smem:[#allocation2]]  ;;  %s144_s29 = sshll.u32 %s231_s28, 4  ;;  %s145_s29 = int_to_ptr.vmem [resolvable:$true] %s144_s29 }
  0x18   :  { %47 = vrot.lane.b32.xlu1 %v253_v1, %s225_s0  ;;  %41 = vrot.lane.b32.xlu0 %v35_v0, %s227_s18  ;;  %s261_s23 = sld [smem:[#allocation2 + $0x2]]  ;;  %s197_s30 = scalar_lea.vmem %s145_s29, 256 }
  0x19   :  { %s263_s24 = sld [smem:[#allocation2 + $0x3]]  ;;  %p198_p5 = scmp.ne.s32.totalorder %s145_s29, %s197_s30 }
  0x1a   :  { %s267_s25 = sld [smem:[#allocation2 + $0x4]]  ;;  %p202_p6 = scmp.lt.s32.totalorder %s145_s29, %s145_s29 }
  0x1b   :  { %s270_s26 = sld [smem:[#allocation2 + $0x5]]  ;;  %p203_p7 = scmp.lt.s32.totalorder %s197_s30, %s197_s30 }
  0x1c   :  { %72 = vrot.lane.b32.xlu1 %v253_v1, %s226_s17  ;;  %62 = vrot.lane.b32.xlu0 %v253_v1, %s227_s18  ;;  %v67_v4 = vstv %s154_s21  ;;  %s275_s27 = sld [smem:[#allocation2 + $0x6]] }
  0x1d   :  { %v59_v6 = vstv %s58_s22  ;;  %p204_p8 = por %p203_p7, %p202_p6 }
  0x1e   :  { %v77_v12 = vstv %s261_s23 }
  0x1f   :  { %v83_v17 = vstv %s263_s24  ;;  %p205_p9 = pnand %p204_p8, %p198_p5 }
  0x20   :  { %90 = vrot.lane.b32.xlu1 %v253_v1, %s228_s1  ;;  %88 = vrot.lane.b32.xlu0 %v35_v0, %s228_s1  ;;  %v84_v24 = vmul.f32 %v83_v17, %v35_v0  ;;  %v85_v30 = vmul.f32 %v83_v17, %v253_v1  ;;  %v98_v32 = vstv %s267_s25 }
  0x21   :  { %v114_v35 = vstv %s270_s26 }
  0x22   :  { %v131_v46 = vstv %s275_s27 }
  0x24   :  { %103 = vrot.lane.b32.xlu1 %v35_v0, %s229_s19  ;;  %105 = vrot.lane.b32.xlu0 %v253_v1, %s229_s19 }
  0x28   :  { %119 = vrot.lane.b32.xlu1 %v35_v0, %s230_s20  ;;  %121 = vrot.lane.b32.xlu0 %v253_v1, %s230_s20 }
  0x86   :  { %v46_v2 = vpop.permute.xlu1 %45  ;;  %v39_v3 = vpop.permute.xlu0 %38 }
  0x87   :  { %v54_v5 = vsel %vm53_vm0, %v35_v0, %v39_v3 }
  0x88   :  { %v78_v21 = vmul.f32 %v77_v12, %v54_v5 }
  0x8a   :  { %v48_v7 = vpop.permute.xlu1 %47  ;;  %v42_v8 = vpop.permute.xlu0 %41 }
  0x8b   :  { %v56_v9 = vsel %vm55_vm1, %v54_v5, %v42_v8  ;;  %v50_v13 = vsel %vm49_vm2, %v46_v2, %v48_v7 }
  0x8c   :  { %v57_v10 = vsel %vm49_vm2, %v56_v9, %v46_v2  ;;  %v68_v11 = vmul.f32 %v67_v4, %v56_v9  ;;  %v61_v22 = vmul.f32 %v59_v6, %v50_v13 }
  0x8d   :  { %v60_v14 = vmul.f32 %v59_v6, %v57_v10 }
  0x8e   :  { %v73_v15 = vpop.permute.xlu1 %72  ;;  %v63_v16 = vpop.permute.xlu0 %62 }
  0x8f   :  { %v70_v18 = vadd.f32 %v68_v11, %v60_v14  ;;  %v74_v19 = vsel %vm53_vm0, %v39_v3, %v73_v15  ;;  %v64_v20 = vsel %vm55_vm1, %v42_v8, %v63_v16 }
  0x90   :  { %v69_v23 = vmul.f32 %v67_v4, %v64_v20  ;;  %v79_v26 = vmul.f32 %v77_v12, %v74_v19 }
  0x91   :  { %v80_v25 = vadd.f32 %v78_v21, %v70_v18 }
  0x92   :  { %v71_v27 = vadd.f32 %v69_v23, %v61_v22  ;;  %v91_v28 = vpop.permute.xlu1 %90  ;;  %v89_v29 = vpop.permute.xlu0 %88 }
  0x93   :  { %v96_v31 = vsel %vm92_vm3, %v91_v28, %v253_v1  ;;  %v93_v33 = vsel %vm92_vm3, %v89_v29, %v91_v28  ;;  %v86_v37 = vadd.f32 %v84_v24, %v80_v25 }
  0x94   :  { %v81_v34 = vadd.f32 %v79_v26, %v71_v27  ;;  %v100_v36 = vmul.f32 %v98_v32, %v96_v31  ;;  %v99_v38 = vmul.f32 %v98_v32, %v93_v33 }
  0x96   :  { %v104_v39 = vpop.permute.xlu1 %103  ;;  %v106_v40 = vpop.permute.xlu0 %105  ;;  %v87_v41 = vadd.f32 %v85_v30, %v81_v34  ;;  %v101_v47 = vadd.f32 %v99_v38, %v86_v37 }
  0x97   :  { %v108_v42 = vsel %vm107_vm4, %v104_v39, %v106_v40  ;;  %v111_v43 = vsel %vm107_vm4, %v106_v40, %v91_v28 }
  0x98   :  { %v112_v44 = vsel %vm92_vm3, %v111_v43, %v253_v1  ;;  %v115_v45 = vmul.f32 %v114_v35, %v108_v42  ;;  %v102_v50 = vadd.f32 %v100_v36, %v87_v41 }
  0x99   :  { %v116_v51 = vmul.f32 %v114_v35, %v112_v44 }
  0x9a   :  { %v120_v48 = vpop.permute.xlu1 %119  ;;  %v122_v49 = vpop.permute.xlu0 %121  ;;  %v117_v56 = vadd.f32 %v115_v45, %v101_v47 }
  0x9b   :  { %v124_v52 = vsel %vm123_vm5, %v120_v48, %v122_v49  ;;  %v127_v53 = vsel %vm123_vm5, %v122_v49, %v106_v40  ;;  %v118_v58 = vadd.f32 %v116_v51, %v102_v50 }
  0x9c   :  { %v128_v54 = vsel %vm107_vm4, %v127_v53, %v91_v28  ;;  %v132_v55 = vmul.f32 %v131_v46, %v124_v52 }
  0x9d   :  { %v129_v57 = vsel %vm92_vm3, %v128_v54, %v253_v1 }
  0x9e   :  { %v133_v59 = vmul.f32 %v131_v46, %v129_v57  ;;  %v134_v60 = vadd.f32 %v132_v55, %v117_v56 }
  0xa0   :  { %v135_v61 = vadd.f32 %v133_v59, %v118_v58  ;;  %136 = vst [vmem:[#allocation7] sm:$0xff] %v134_v60 }
  0xa2   :  { %137 = vst [vmem:[#allocation7 + $0x8] sm:$0xff] %v135_v61 }
  0xa3   :  { %208 = shalt.err (!%p205_p9)
}
  0xa4   :  { %147 = dma.vmem_to_hbm [thread:$0]  %s145_s29, 256, %s296_s2, [#allocation4]  }
  0xa5   :  { %221 = dma.done.wait [#allocation4], 256  }
  0xa6   :  { %222 = vsyncadd [#allocation4], 4294967040 }
  0xa7   :  { %151 = vsyncpa [#allocation3], 1 }
  0xa8   :  { %152 = vsyncpa [#allocation4], 1 }
  0xa9   :  { %153 = vsyncpa [#allocation5], 1 }

</bundles_post_ra>
